<compile_context>
chip_gen: v7x
topology: tpu7x:2x2x1
jax: 0.10.0
libtpu: 0.0.40
codegen_flags: <defaults>
</compile_context>

<pallas_src>
import functools

import jax
import jax.numpy as jnp
from jax.experimental import pallas as pl
from jax.experimental.pallas import tpu as pltpu

LANE = 128
MIB = 1024 * 1024
_TM_CAP = 2048   # max rows per output tile
_TK_CAP = 4096   # max reduction columns per grid step


def _round_up(x: int, m: int) -> int:
    return ((x + m - 1) // m) * m


def _vmem_capacity_bytes() -> int:
    """Per-TensorCore VMEM capacity; conservative fallback if the query fails."""
    try:
        cap = int(pltpu.get_tpu_info().vmem_capacity_bytes)
    except Exception:
        cap = 64 * MIB          # v7x per-TC capacity: safe on every generation
    return max(32 * MIB, min(cap, 128 * MIB))


_VMEM_CAP = _vmem_capacity_bytes()
_VMEM_BUDGET = int(_VMEM_CAP * 0.60)   # what the tile planner may consume
_VMEM_LIMIT = int(_VMEM_CAP * 0.85)    # scoped-vmem cap handed to Mosaic


# ---------------------------------------------------------------------------
# Kernel A: per-layer fused kernel  out = relu(A_hat @ (X @ W) + b)
#   grid = (row tiles, K tiles); reduction axis last; f32 accumulator scratch;
#   W and bias resident; X either fully VMEM-resident or streamed per K tile.
# ---------------------------------------------------------------------------
def _make_layer_kernel(tk: int, x_resident: bool):
    def kernel(a_ref, x_ref, w_ref, b_ref, o_ref, acc_ref):
        k = pl.program_id(1)

        @pl.when(k == 0)
        def _():
            acc_ref[...] = jnp.zeros_like(acc_ref)

        if x_resident:
            off = pl.multiple_of(k * tk, tk)
            x_blk = x_ref[pl.ds(off, tk), :]
        else:
            x_blk = x_ref[...]

        # Fused feature transform: xw_k recomputed per row tile (e_pad/tm extra
        # MXU flops), which is free while the kernel is HBM-bound.
        xw_k = jnp.dot(x_blk, w_ref[...],
                       preferred_element_type=jnp.float32).astype(jnp.bfloat16)
        acc_ref[...] += jnp.dot(a_ref[...], xw_k,
                                preferred_element_type=jnp.float32)

        @pl.when(k == pl.num_programs(1) - 1)
        def _():
            h = acc_ref[...] + b_ref[...]          # bias added once per row tile
            o_ref[...] = jnp.maximum(h, 0.0).astype(o_ref.dtype)

    return kernel


def _gcn_layer_tiled(a_hat, x, w_pad, b_pad, *, tm, tk, x_resident, out_dtype):
    n_pad, e_pad = x.shape
    if x_resident:
        x_spec = pl.BlockSpec((n_pad, e_pad), lambda i, k: (0, 0))   # DMA'd once
    else:
        x_spec = pl.BlockSpec((tk, e_pad), lambda i, k: (k, 0))      # streamed
    return pl.pallas_call(
        _make_layer_kernel(tk, x_resident),
        out_shape=jax.ShapeDtypeStruct((n_pad, e_pad), out_dtype),
        grid_spec=pltpu.PrefetchScalarGridSpec(
            num_scalar_prefetch=0,
            grid=(n_pad // tm, n_pad // tk),            # reduction axis last
            in_specs=[
                pl.BlockSpec((tm, tk), lambda i, k: (i, k)),        # A_hat tile
                x_spec,                                             # X
                pl.BlockSpec((e_pad, e_pad), lambda i, k: (0, 0)),  # W (resident)
                pl.BlockSpec((1, e_pad), lambda i, k: (0, 0)),      # bias
            ],
            out_specs=pl.BlockSpec((tm, e_pad), lambda i, k: (i, 0)),
            scratch_shapes=[pltpu.VMEM((tm, e_pad), jnp.float32)],
        ),
        compiler_params=pltpu.CompilerParams(
            # TODO(synk): v7x — CORE_PARALLEL / core_map on the row axis if
            # "parallel" does not shard across the 2 TensorCores.
            dimension_semantics=("parallel", "arbitrary"),
            vmem_limit_bytes=_VMEM_LIMIT,
        ),
    )(a_hat, x, w_pad, b_pad)


# ---------------------------------------------------------------------------
# Kernel B: all layers fused, A_hat + features resident in VMEM.
#   The dominant N^2 bf16 stream is read from HBM exactly once (not per layer).
# ---------------------------------------------------------------------------
def _make_fused_all_kernel(num_layers: int):
    def kernel(a_ref, x_ref, ws_ref, bs_ref, o_ref, x_cur):
        for l in range(num_layers):                     # static unroll
            src = x_ref if l == 0 else x_cur
            xw = jnp.dot(src[...], ws_ref[l],
                         preferred_element_type=jnp.float32).astype(jnp.bfloat16)
            h = jnp.dot(a_ref[...], xw, preferred_element_type=jnp.float32)
            h = jnp.maximum(h + bs_ref[l], 0.0)
            if l == num_layers - 1:
                o_ref[...] = h                          # final layer in f32
            else:
                x_cur[...] = h.astype(x_cur.dtype)      # intermediate in bf16
    return kernel


def _gcn_forward_fused_all(a_hat, x0, ws, bs):
    n_pad, e_pad = x0.shape
    num_layers = ws.shape[0]
    return pl.pallas_call(
        _make_fused_all_kernel(num_layers),
        out_shape=jax.ShapeDtypeStruct((n_pad, e_pad), jnp.float32),
        grid_spec=pltpu.PrefetchScalarGridSpec(
            num_scalar_prefetch=0,
            grid=(1,),
            in_specs=[
                pl.BlockSpec((n_pad, n_pad), lambda i: (0, 0)),              # A_hat
                pl.BlockSpec((n_pad, e_pad), lambda i: (0, 0)),              # X
                pl.BlockSpec((num_layers, e_pad, e_pad), lambda i: (0, 0, 0)),  # W stack
                pl.BlockSpec((num_layers, 1, e_pad), lambda i: (0, 0, 0)),      # b stack
            ],
            out_specs=pl.BlockSpec((n_pad, e_pad), lambda i: (0, 0)),
            scratch_shapes=[pltpu.VMEM((n_pad, e_pad), jnp.bfloat16)],
        ),
        compiler_params=pltpu.CompilerParams(
            dimension_semantics=("arbitrary",),
            vmem_limit_bytes=_VMEM_LIMIT,
        ),
    )(a_hat, x0, ws, bs)


# ---------------------------------------------------------------------------
# VMEM accounting + tile planning (all trace-time, static shapes only)
# ---------------------------------------------------------------------------
def _divisor_tiles(n_pad: int, cap: int):
    return [d for d in range(LANE, min(n_pad, cap) + 1, LANE) if n_pad % d == 0]


def _tiled_vmem_bytes(tm, tk, n_pad, e_pad, x_resident):
    b = 2 * tm * tk * 2                                            # A_hat (bf16, 2x buf)
    b += (2 * n_pad * e_pad * 2) if x_resident else (2 * tk * e_pad * 2)  # X
    b += 2 * e_pad * e_pad * 2 + 2 * e_pad * 4                     # W + bias
    b += 2 * tm * e_pad * 4                                        # output (worst f32)
    b += tm * e_pad * 4                                            # f32 accumulator
    b += tk * e_pad * 8                                            # xw_k temporaries
    b += 2 * MIB                                                   # headroom
    return b


def _plan_tiles(n_pad: int, e_pad: int, budget: int):
    best = None
    for x_resident in (True, False):
        for tm in _divisor_tiles(n_pad, _TM_CAP):
            for tk in _divisor_tiles(n_pad, _TK_CAP):
                if _tiled_vmem_bytes(tm, tk, n_pad, e_pad, x_resident) > budget:
                    continue
                key = (tm * tk, 1 if x_resident else 0, tm)
                if best is None or key > best[0]:
                    best = (key, tm, tk, x_resident)
    if best is None:
        return LANE, LANE, False
    return best[1], best[2], best[3]


def _fused_all_vmem_bytes(n_pad, e_pad, num_layers):
    b = 2 * n_pad * n_pad * 2                     # A_hat (bf16, conservative 2x)
    b += n_pad * n_pad * 2                        # possible materialized read copy
    b += 2 * n_pad * e_pad * 2                    # X input
    b += 2 * num_layers * e_pad * e_pad * 2       # stacked W
    b += 2 * num_layers * e_pad * 4               # stacked bias
    b += 2 * n_pad * e_pad * 4                    # f32 output
    b += n_pad * e_pad * 2                        # x_cur scratch
    b += n_pad * e_pad * 12                       # per-layer matmul temporaries
    b += 2 * MIB
    return b


# ---------------------------------------------------------------------------
# Glue (plain JAX): normalized adjacency, parameter init, forward, decode.
# ---------------------------------------------------------------------------
def _pad_sizes(num_nodes: int, embedding_size: int):
    n_pad = _round_up(max(num_nodes, LANE), LANE)
    e_gran = LANE if embedding_size <= LANE else 256   # 256-wide MXU on v6e/v7x
    e_pad = _round_up(embedding_size, e_gran)
    return n_pad, e_pad


def build_norm_adj(edge_index: jax.Array, num_nodes: int, n_pad: int) -> jax.Array:
    """Dense D^-1/2 (A + I) D^-1/2 (gcn_norm), built directly in bf16, zero-padded."""
    src, dst = edge_index[0], edge_index[1]
    loop = jnp.arange(num_nodes, dtype=edge_index.dtype)
    src = jnp.concatenate([src, loop])
    dst = jnp.concatenate([dst, loop])
    deg = jnp.zeros((num_nodes,), jnp.float32).at[dst].add(1.0)
    deg_inv_sqrt = jnp.where(deg > 0.0, jax.lax.rsqrt(deg), 0.0)
    norm = (deg_inv_sqrt[src] * deg_inv_sqrt[dst]).astype(jnp.bfloat16)
    # message flows src -> dst, aggregated at dst:  A_hat[dst, src] = norm
    return jnp.zeros((n_pad, n_pad), jnp.bfloat16).at[dst, src].add(norm)


def xavier_uniform(key, shape):
    fan_in, fan_out = shape
    limit = jnp.sqrt(6.0 / (fan_in + fan_out))
    return jax.random.uniform(key, shape, jnp.float32, -limit, limit)


def init_params(key, num_nodes, embedding_size, num_layers):
    keys = jax.random.split(key, num_layers + 1)
    embedding = xavier_uniform(keys[0], (num_nodes, embedding_size))
    weights = tuple(xavier_uniform(keys[i + 1], (embedding_size, embedding_size))
                    for i in range(num_layers))
    biases = tuple(jnp.zeros((embedding_size,), jnp.float32)
                   for _ in range(num_layers))
    return embedding, weights, biases


@functools.partial(jax.jit, static_argnames=("force_tiled",))
def gcn_model_forward(embedding, weights, biases, edge_index, *, force_tiled=False):
    num_nodes, embedding_size = embedding.shape
    num_layers = len(weights)
    if num_layers == 0:
        return embedding

    n_pad, e_pad = _pad_sizes(num_nodes, embedding_size)
    a_hat = build_norm_adj(edge_index, num_nodes, n_pad)

    # Zero-padded node features: pad rows/cols stay inert (A_hat pad columns and
    # W/b pad entries are zero), and are sliced away at the end.
    x = jnp.zeros((n_pad, e_pad), jnp.bfloat16)
    x = x.at[:num_nodes, :embedding_size].set(embedding.astype(jnp.bfloat16))

    w_pads, b_pads = [], []
    for w, b in zip(weights, biases):
        wp = jnp.zeros((e_pad, e_pad), jnp.bfloat16)
        wp = wp.at[:embedding_size, :embedding_size].set(w.astype(jnp.bfloat16))
        bp = jnp.zeros((1, e_pad), jnp.float32).at[0, :embedding_size].set(b)
        w_pads.append(wp)
        b_pads.append(bp)

    use_fused_all = (not force_tiled) and (
        _fused_all_vmem_bytes(n_pad, e_pad, num_layers) <= _VMEM_BUDGET)

    if use_fused_all:
        out = _gcn_forward_fused_all(a_hat, x, jnp.stack(w_pads), jnp.stack(b_pads))
    else:
        tm, tk, x_resident = _plan_tiles(n_pad, e_pad, _VMEM_BUDGET)
        for layer_idx in range(num_layers):
            out_dtype = jnp.float32 if layer_idx == num_layers - 1 else jnp.bfloat16
            x = _gcn_layer_tiled(a_hat, x, w_pads[layer_idx], b_pads[layer_idx],
                                 tm=tm, tk=tk, x_resident=x_resident,
                                 out_dtype=out_dtype)
        out = x
        # dropout = identity (inference mode)

    return out[:num_nodes, :embedding_size]


def decode(z: jax.Array, edge_label_index: jax.Array) -> jax.Array:
    src = z[edge_label_index[0]]
    dst = z[edge_label_index[1]]
    return (src * dst).sum(axis=-1)


def reference_forward(embedding, weights, biases, edge_index):
    """Pure-JAX f32 reference of the PyTorch forward (eval mode)."""
    num_nodes = embedding.shape[0]
    src, dst = edge_index[0], edge_index[1]
    loop = jnp.arange(num_nodes, dtype=edge_index.dtype)
    src = jnp.concatenate([src, loop])
    dst = jnp.concatenate([dst, loop])
    deg = jnp.zeros((num_nodes,), jnp.float32).at[dst].add(1.0)
    dis = jnp.where(deg > 0.0, jax.lax.rsqrt(deg), 0.0)
    norm = dis[src] * dis[dst]
    a = jnp.zeros((num_nodes, num_nodes), jnp.float32).at[dst, src].add(norm)
    x = embedding
    for w, b in zip(weights, biases):
        x = jnp.maximum(a @ (x @ w) + b, 0.0)
    return x


# ---------------------------------------------------------------------------
if __name__ == "__main__":
    num_nodes = 16
    embedding_size = 32
    num_layers = 2
    num_edges = 40

    key = jax.random.PRNGKey(0)
    pkey, ekey = jax.random.split(key)

    embedding, weights, biases = init_params(pkey, num_nodes, embedding_size, num_layers)
    # deterministic random user-item interaction edges, shape (2, num_edges)
    edge_index = jax.random.randint(ekey, (2, num_edges), 0, num_nodes, jnp.int32)

    # Path 1: all-layers fused kernel (A_hat resident in VMEM) — chosen when it fits.
    z = jax.block_until_ready(
        gcn_model_forward(embedding, weights, biases, edge_index))
    # Path 2: per-layer tiled kernel (the path used by graphs too large for path 1).
    z_tiled = jax.block_until_ready(
        gcn_model_forward(embedding, weights, biases, edge_index, force_tiled=True))

    assert z.shape == (num_nodes, embedding_size)
    assert z.dtype == jnp.float32
    assert bool(jnp.all(jnp.isfinite(z)))

    z_ref = reference_forward(embedding, weights, biases, edge_index)
    assert bool(jnp.allclose(z, z_ref, rtol=5e-2, atol=5e-2)), "fused path mismatch"
    assert bool(jnp.allclose(z_tiled, z_ref, rtol=5e-2, atol=5e-2)), "tiled path mismatch"
    assert bool(jnp.allclose(z, z_tiled, rtol=2e-2, atol=2e-2)), "paths disagree"

    # quick exercise of decode() on a few label edges
    edge_label_index = jnp.array([[0, 1, 2], [3, 4, 5]], jnp.int32)
    scores = jax.block_until_ready(decode(z, edge_label_index))
    assert scores.shape == (3,)
    assert bool(jnp.all(jnp.isfinite(scores)))

    print("KERNEL_OK")
</pallas_src>

<mosaic_0001>
module attributes {stable_mosaic.version = 11 : i64} {
  func.func @kernel(%arg0: i32, %arg1: memref<128x128xbf16, #tpu.memory_space<vmem>>, %arg2: memref<128x128xbf16, #tpu.memory_space<vmem>>, %arg3: memref<2x128x128xbf16, #tpu.memory_space<vmem>>, %arg4: memref<2x1x128xf32, #tpu.memory_space<vmem>>, %arg5: memref<128x128xf32, #tpu.memory_space<vmem>>, %arg6: memref<128x128xbf16, #tpu.memory_space<vmem>>) attributes {dimension_semantics = [#tpu.dimension_semantics<arbitrary>], iteration_bounds = array<i64: 1>, scalar_prefetch = 0 : i64, scratch_operands = 1 : i64, tpu.core_type = #tpu.core_type<tc>, window_params = [{pipeline_mode = #tpu.pipeline_mode<synchronous>, transform_indices = @transform_0, window_bounds = array<i64: 128, 128>}, {pipeline_mode = #tpu.pipeline_mode<synchronous>, transform_indices = @transform_1, window_bounds = array<i64: 128, 128>}, {pipeline_mode = #tpu.pipeline_mode<synchronous>, transform_indices = @transform_2, window_bounds = array<i64: 2, 128, 128>}, {pipeline_mode = #tpu.pipeline_mode<synchronous>, transform_indices = @transform_3, window_bounds = array<i64: 2, 1, 128>}, {pipeline_mode = #tpu.pipeline_mode<synchronous>, transform_indices = @transform_4, window_bounds = array<i64: 128, 128>}]} {
    %c0 = arith.constant 0 : index
    %c0_0 = arith.constant 0 : index
    %0 = vector.load %arg2[%c0, %c0_0] : memref<128x128xbf16, #tpu.memory_space<vmem>>, vector<128x128xbf16>
    %c0_1 = arith.constant 0 : index
    %c0_2 = arith.constant 0 : index
    %c0_3 = arith.constant 0 : index
    %1 = vector.load %arg3[%c0_1, %c0_2, %c0_3] : memref<2x128x128xbf16, #tpu.memory_space<vmem>>, vector<1x128x128xbf16>
    %2 = vector.shape_cast %1 : vector<1x128x128xbf16> to vector<128x128xbf16>
    %cst = arith.constant dense<0.000000e+00> : vector<128x128xf32>
    %3 = tpu.matmul %0, %2, %cst {dimension_numbers = #tpu.dot_dimension_numbers<[1], [0], [0], [1], [0, 0, 1, 1], [], []>} : vector<128x128xbf16>, vector<128x128xbf16>, vector<128x128xf32> -> vector<128x128xf32>
    %4 = arith.truncf %3 : vector<128x128xf32> to vector<128x128xbf16>
    %c0_4 = arith.constant 0 : index
    %c0_5 = arith.constant 0 : index
    %5 = vector.load %arg1[%c0_4, %c0_5] : memref<128x128xbf16, #tpu.memory_space<vmem>>, vector<128x128xbf16>
    %cst_6 = arith.constant dense<0.000000e+00> : vector<128x128xf32>
    %6 = tpu.matmul %5, %4, %cst_6 {dimension_numbers = #tpu.dot_dimension_numbers<[1], [0], [0], [1], [0, 0, 1, 1], [], []>} : vector<128x128xbf16>, vector<128x128xbf16>, vector<128x128xf32> -> vector<128x128xf32>
    %c0_7 = arith.constant 0 : index
    %c0_8 = arith.constant 0 : index
    %c0_9 = arith.constant 0 : index
    %7 = vector.load %arg4[%c0_7, %c0_8, %c0_9] : memref<2x1x128xf32, #tpu.memory_space<vmem>>, vector<1x1x128xf32>
    %8 = vector.shape_cast %7 : vector<1x1x128xf32> to vector<1x128xf32>
    %9 = vector.broadcast %8 : vector<1x128xf32> to vector<128x128xf32>
    %10 = arith.addf %6, %9 : vector<128x128xf32>
    %cst_10 = arith.constant 0.000000e+00 : f32
    %11 = vector.broadcast %cst_10 : f32 to vector<128x128xf32>
    %12 = arith.maximumf %10, %11 : vector<128x128xf32>
    %13 = arith.truncf %12 : vector<128x128xf32> to vector<128x128xbf16>
    %c0_11 = arith.constant 0 : index
    %c0_12 = arith.constant 0 : index
    %14 = vector.load %arg6[%c0_11, %c0_12] : memref<128x128xbf16, #tpu.memory_space<vmem>>, vector<128x128xbf16>
    tpu.vector_store %arg6[%c0_11, %c0_12], %13 {strides = array<i32>} : memref<128x128xbf16, #tpu.memory_space<vmem>>, vector<128x128xbf16>,
    %c0_13 = arith.constant 0 : index
    %c0_14 = arith.constant 0 : index
    %15 = vector.load %arg6[%c0_13, %c0_14] : memref<128x128xbf16, #tpu.memory_space<vmem>>, vector<128x128xbf16>
    %c1 = arith.constant 1 : index
    %c0_15 = arith.constant 0 : index
    %c0_16 = arith.constant 0 : index
    %16 = vector.load %arg3[%c1, %c0_15, %c0_16] : memref<2x128x128xbf16, #tpu.memory_space<vmem>>, vector<1x128x128xbf16>
    %17 = vector.shape_cast %16 : vector<1x128x128xbf16> to vector<128x128xbf16>
    %cst_17 = arith.constant dense<0.000000e+00> : vector<128x128xf32>
    %18 = tpu.matmul %15, %17, %cst_17 {dimension_numbers = #tpu.dot_dimension_numbers<[1], [0], [0], [1], [0, 0, 1, 1], [], []>} : vector<128x128xbf16>, vector<128x128xbf16>, vector<128x128xf32> -> vector<128x128xf32>
    %19 = arith.truncf %18 : vector<128x128xf32> to vector<128x128xbf16>
    %c0_18 = arith.constant 0 : index
    %c0_19 = arith.constant 0 : index
    %20 = vector.load %arg1[%c0_18, %c0_19] : memref<128x128xbf16, #tpu.memory_space<vmem>>, vector<128x128xbf16>
    %cst_20 = arith.constant dense<0.000000e+00> : vector<128x128xf32>
    %21 = tpu.matmul %20, %19, %cst_20 {dimension_numbers = #tpu.dot_dimension_numbers<[1], [0], [0], [1], [0, 0, 1, 1], [], []>} : vector<128x128xbf16>, vector<128x128xbf16>, vector<128x128xf32> -> vector<128x128xf32>
    %c1_21 = arith.constant 1 : index
    %c0_22 = arith.constant 0 : index
    %c0_23 = arith.constant 0 : index
    %22 = vector.load %arg4[%c1_21, %c0_22, %c0_23] : memref<2x1x128xf32, #tpu.memory_space<vmem>>, vector<1x1x128xf32>
    %23 = vector.shape_cast %22 : vector<1x1x128xf32> to vector<1x128xf32>
    %24 = vector.broadcast %23 : vector<1x128xf32> to vector<128x128xf32>
    %25 = arith.addf %21, %24 : vector<128x128xf32>
    %cst_24 = arith.constant 0.000000e+00 : f32
    %26 = vector.broadcast %cst_24 : f32 to vector<128x128xf32>
    %27 = arith.maximumf %25, %26 : vector<128x128xf32>
    %c0_25 = arith.constant 0 : index
    %c0_26 = arith.constant 0 : index
    %28 = vector.load %arg5[%c0_25, %c0_26] : memref<128x128xf32, #tpu.memory_space<vmem>>, vector<128x128xf32>
    tpu.vector_store %arg5[%c0_25, %c0_26], %27 {strides = array<i32>} : memref<128x128xf32, #tpu.memory_space<vmem>>, vector<128x128xf32>,
    return
  }
  func.func @transform_0(%arg0: i32) -> (i32, i32) {
    %c0_i32 = arith.constant 0 : i32
    %c0_i32_0 = arith.constant 0 : i32
    %c0_i32_1 = arith.constant 0 : i32
    return %c0_i32, %c0_i32_0 : i32, i32
  }
  func.func @transform_1(%arg0: i32) -> (i32, i32) {
    %c0_i32 = arith.constant 0 : i32
    %c0_i32_0 = arith.constant 0 : i32
    %c0_i32_1 = arith.constant 0 : i32
    return %c0_i32, %c0_i32_0 : i32, i32
  }
  func.func @transform_2(%arg0: i32) -> (i32, i32, i32) {
    %c0_i32 = arith.constant 0 : i32
    %c0_i32_0 = arith.constant 0 : i32
    %c0_i32_1 = arith.constant 0 : i32
    %c0_i32_2 = arith.constant 0 : i32
    return %c0_i32, %c0_i32_0, %c0_i32_1 : i32, i32, i32
  }
  func.func @transform_3(%arg0: i32) -> (i32, i32, i32) {
    %c0_i32 = arith.constant 0 : i32
    %c0_i32_0 = arith.constant 0 : i32
    %c0_i32_1 = arith.constant 0 : i32
    %c0_i32_2 = arith.constant 0 : i32
    return %c0_i32, %c0_i32_0, %c0_i32_1 : i32, i32, i32
  }
  func.func @transform_4(%arg0: i32) -> (i32, i32) {
    %c0_i32 = arith.constant 0 : i32
    %c0_i32_0 = arith.constant 0 : i32
    %c0_i32_1 = arith.constant 0 : i32
    return %c0_i32, %c0_i32_0 : i32, i32
  }
}

</mosaic_0001>

<bundles_post_ra>
// kernel: gcn_model_forward.1
= control target key start
LH: loop header
LB: loop body
LE: loop exit
PB: predicated region body
PF: predicated region fallthrough
CT: control target
= control target key end

     0   :  { %s1324_s2 = inlined_call_operand.vmem [shape: bf16[2,128,128], index: 2, kind: input, shape index: {}]   ;;  %s1325_s1 = inlined_call_operand.vmem [shape: bf16[128,128], index: 1, kind: input, shape index: {}]   ;;  %s1326_s0 = inlined_call_operand.vmem [shape: bf16[128,128], index: 0, kind: input, shape index: {}]   ;;  %s1327_s3 = inlined_call_operand.vmem [shape: f32[2,1,128], index: 3, kind: input, shape index: {}]   ;;  %s1328_s4 = inlined_call_operand.vmem [shape: f32[128,128], index: 4, kind: output, shape index: {}]  }
   0x1   :  { %v1085_v0 = vld [vmem:[%s1324_s2] sm:$0xff]   ;;  %v1086_v1 = vld [vmem:[%s1324_s2 + $0x8] sm:$0xff]   ;;  %v1087_v2 = vld [vmem:[%s1324_s2 + $0x10] sm:$0xff]  }
   0x2   :  { %957 = vmatprep.subr.bf16.mxu0 %v1085_v0  ;;  %v1088_v3 = vld [vmem:[%s1324_s2 + $0x18] sm:$0xff]   ;;  %v1093_v4 = vld [vmem:[%s1325_s1] sm:$0xff]   ;;  %v1090_v6 = vld [vmem:[%s1324_s2 + $0x28] sm:$0xff]  }
   0x3   :  { %958 = vmatpush3.bf16.msra.mxu0 %v1085_v0  ;;  %973 = vmatprep.mubr.bf16.mxu0 %v1093_v4  ;;  %v1089_v5 = vld [vmem:[%s1324_s2 + $0x20] sm:$0xff]   ;;  %v1091_v7 = vld [vmem:[%s1324_s2 + $0x30] sm:$0xff]   ;;  %v1092_v8 = vld [vmem:[%s1324_s2 + $0x38] sm:$0xff]  }
   0x4   :  { %959 = vmatprep.subr.bf16.mxu0 %v1086_v1  ;;  %v1094_v9 = vld [vmem:[%s1325_s1 + $0x8] sm:$0xff]   ;;  %v1095_v10 = vld [vmem:[%s1325_s1 + $0x10] sm:$0xff]   ;;  %v1096_v11 = vld [vmem:[%s1325_s1 + $0x18] sm:$0xff]  }
   0x5   :  { %v1097_v12 = vld [vmem:[%s1325_s1 + $0x20] sm:$0xff]   ;;  %v1098_v13 = vld [vmem:[%s1325_s1 + $0x28] sm:$0xff]   ;;  %v1099_v14 = vld [vmem:[%s1325_s1 + $0x30] sm:$0xff]  }
   0x6   :  { %v1100_v15 = vld [vmem:[%s1325_s1 + $0x38] sm:$0xff]   ;;  %v1101_v16 = vld [vmem:[%s1326_s0] sm:$0xff]   ;;  %v1110_v18 = vld [vmem:[%s1324_s2 + $0x48] sm:$0xff]  }
   0x7   :  { %960 = vmatpush3.bf16.msra.mxu0 %v1086_v1  ;;  %1005 = vmatprep.mubr.bf16.mxu1 %v1101_v16  ;;  %v1109_v17 = vld [vmem:[%s1324_s2 + $0x40] sm:$0xff]   ;;  %v1111_v19 = vld [vmem:[%s1324_s2 + $0x50] sm:$0xff]   ;;  %v1112_v20 = vld [vmem:[%s1324_s2 + $0x58] sm:$0xff]  }
   0x8   :  { %961 = vmatprep.subr.bf16.mxu0 %v1087_v2  ;;  %v1113_v21 = vld [vmem:[%s1324_s2 + $0x60] sm:$0xff]   ;;  %v1114_v22 = vld [vmem:[%s1324_s2 + $0x68] sm:$0xff]   ;;  %v1103_v48 = vld [vmem:[%s1326_s0 + $0x10] sm:$0xff]  }
   0x9   :  { %v1102_v47 = vld [vmem:[%s1326_s0 + $0x8] sm:$0xff]   ;;  %v1104_v49 = vld [vmem:[%s1326_s0 + $0x18] sm:$0xff]   ;;  %v1105_v50 = vld [vmem:[%s1326_s0 + $0x20] sm:$0xff]  }
   0xa   :  { %v1106_v51 = vld [vmem:[%s1326_s0 + $0x28] sm:$0xff]   ;;  %v1107_v52 = vld [vmem:[%s1326_s0 + $0x30] sm:$0xff]   ;;  %v1108_v53 = vld [vmem:[%s1326_s0 + $0x38] sm:$0xff]  }
   0xb   :  { %962 = vmatpush3.bf16.msra.mxu0 %v1087_v2  ;;  %v1115_v54 = vld [vmem:[%s1324_s2 + $0x70] sm:$0xff]   ;;  %v1116_v55 = vld [vmem:[%s1324_s2 + $0x78] sm:$0xff]   ;;  %v850_v56 = vld [vmem:[%s1327_s3] ss:$0 sm:$0xff] }
   0xc   :  { %963 = vmatprep.subr.bf16.mxu0 %v1088_v3 }
   0xf   :  { %964 = vmatpush3.bf16.msra.mxu0 %v1088_v3 }
  0x10   :  { %965 = vmatprep.subr.bf16.mxu0 %v1089_v5 }
  0x13   :  { %966 = vmatpush3.bf16.msra.mxu0 %v1089_v5 }
  0x14   :  { %967 = vmatprep.subr.bf16.mxu0 %v1090_v6 }
  0x17   :  { %968 = vmatpush3.bf16.msra.mxu0 %v1090_v6 }
  0x18   :  { %969 = vmatprep.subr.bf16.mxu0 %v1091_v7 }
  0x1b   :  { %970 = vmatpush3.bf16.msra.mxu0 %v1091_v7 }
  0x1c   :  { %971 = vmatprep.subr.bf16.mxu0 %v1092_v8 }
  0x1f   :  { %972 = vmatpush3.bf16.msra.mxu0 %v1092_v8 }
  0x20   :  { %1021 = vmatprep.subr.bf16.mxu0 %v1109_v17 }
  0x22   :  { %974 = vmatmul.mubr.bf16.vlgmr.msra.gmra.mrb[0].mxu0 %v1094_v9 }
  0x23   :  { %977 = vmatprep.mubr.bf16.mxu0 %v1095_v10  ;;  %1022 = vmatpush3.bf16.msra.mxu0 %v1109_v17 }
  0x24   :  { %1023 = vmatprep.subr.bf16.mxu0 %v1110_v18 }
  0x27   :  { %1024 = vmatpush3.bf16.msra.mxu0 %v1110_v18 }
  0x28   :  { %1025 = vmatprep.subr.bf16.mxu0 %v1111_v19 }
  0x2a   :  { %978 = vmatmul.mubr.bf16.gmra.mrb[4].mxu0 %v1096_v11 }
  0x2b   :  { %981 = vmatprep.mubr.bf16.mxu0 %v1097_v12  ;;  %1026 = vmatpush3.bf16.msra.mxu0 %v1111_v19 }
  0x2c   :  { %1027 = vmatprep.subr.bf16.mxu0 %v1112_v20 }
  0x2f   :  { %1028 = vmatpush3.bf16.msra.mxu0 %v1112_v20 }
  0x30   :  { %1029 = vmatprep.subr.bf16.mxu0 %v1113_v21 }
  0x32   :  { %982 = vmatmul.mubr.bf16.gmra.mrb[8].mxu0 %v1098_v13 }
  0x33   :  { %985 = vmatprep.mubr.bf16.mxu0 %v1099_v14  ;;  %1030 = vmatpush3.bf16.msra.mxu0 %v1113_v21 }
  0x34   :  { %1031 = vmatprep.subr.bf16.mxu0 %v1114_v22 }
  0x37   :  { %1032 = vmatpush3.bf16.msra.mxu0 %v1114_v22 }
  0x38   :  { %1033 = vmatprep.subr.bf16.mxu0 %v1115_v54 }
  0x3a   :  { %986 = vmatmul.mubr.bf16.gmra.mrb[12].mxu0 %v1100_v15 }
  0x3b   :  { %1034 = vmatpush3.bf16.msra.mxu0 %v1115_v54 }
  0x3c   :  { %1035 = vmatprep.subr.bf16.mxu0 %v1116_v55 }
  0x3f   :  { %1036 = vmatpush3.bf16.msra.mxu0 %v1116_v55 }
  0xf5   :  { %v975_v23 = vpop.f32.mrb[0].mxu0 }
  0xf6   :  { %v180_v24 = vpop.f32.mrb[1].mxu0 }
  0xf7   :  { %v976_v25 = vpop.f32.mrb[2].mxu0 }
  0xf8   :  { %v244_v26 = vpack.c.bf16 %v976_v25, %v975_v23  ;;  %v183_v27 = vpop.f32.mrb[3].mxu0 }
  0xf9   :  { %v243_v28 = vpack.c.bf16 %v183_v27, %v180_v24 }
  0xfb   :  { %989 = vmatprep.subr.bf16.mxu1 %v243_v28 }
  0xfc   :  { %990 = vmatpush3.bf16.msra.mxu1 %v243_v28 }
  0xfd   :  { %v979_v29 = vpop.f32.mrb[4].mxu0  ;;  %991 = vmatprep.subr.bf16.mxu1 %v244_v26 }
  0xfe   :  { %v196_v30 = vpop.f32.mrb[5].mxu0 }
  0xff   :  { %v980_v31 = vpop.f32.mrb[6].mxu0 }
 0x100   :  { %v246_v32 = vpack.c.bf16 %v980_v31, %v979_v29  ;;  %v199_v33 = vpop.f32.mrb[7].mxu0  ;;  %992 = vmatpush3.bf16.msra.mxu1 %v244_v26 }
 0x101   :  { %v245_v34 = vpack.c.bf16 %v199_v33, %v196_v30 }
 0x103   :  { %993 = vmatprep.subr.bf16.mxu1 %v245_v34 }
 0x104   :  { %994 = vmatpush3.bf16.msra.mxu1 %v245_v34 }
 0x105   :  { %v983_v35 = vpop.f32.mrb[8].mxu0  ;;  %995 = vmatprep.subr.bf16.mxu1 %v246_v32 }
 0x106   :  { %v212_v36 = vpop.f32.mrb[9].mxu0 }
 0x107   :  { %v984_v37 = vpop.f32.mrb[10].mxu0 }
 0x108   :  { %v248_v38 = vpack.c.bf16 %v984_v37, %v983_v35  ;;  %v215_v39 = vpop.f32.mrb[11].mxu0  ;;  %996 = vmatpush3.bf16.msra.mxu1 %v246_v32 }
 0x109   :  { %v247_v40 = vpack.c.bf16 %v215_v39, %v212_v36 }
 0x10b   :  { %997 = vmatprep.subr.bf16.mxu1 %v247_v40 }
 0x10c   :  { %998 = vmatpush3.bf16.msra.mxu1 %v247_v40 }
 0x10d   :  { %v987_v41 = vpop.f32.mrb[12].mxu0  ;;  %999 = vmatprep.subr.bf16.mxu1 %v248_v38 }
 0x10e   :  { %v228_v42 = vpop.f32.mrb[13].mxu0 }
 0x10f   :  { %v988_v43 = vpop.f32.mrb[14].mxu0 }
 0x110   :  { %v250_v44 = vpack.c.bf16 %v988_v43, %v987_v41  ;;  %v231_v45 = vpop.f32.mrb[15].mxu0  ;;  %1000 = vmatpush3.bf16.msra.mxu1 %v248_v38 }
 0x111   :  { %v249_v46 = vpack.c.bf16 %v231_v45, %v228_v42 }
 0x113   :  { %1001 = vmatprep.subr.bf16.mxu1 %v249_v46 }
 0x114   :  { %1002 = vmatpush3.bf16.msra.mxu1 %v249_v46 }
 0x115   :  { %1003 = vmatprep.subr.bf16.mxu1 %v250_v44 }
 0x118   :  { %1004 = vmatpush3.bf16.msra.mxu1 %v250_v44 }
 0x11b   :  { %1006 = vmatmul.mubr.bf16.vlgmr.msra.gmra.mrb[0].mxu1 %v1102_v47 }
 0x11c   :  { %1009 = vmatprep.mubr.bf16.mxu1 %v1103_v48 }
 0x123   :  { %1010 = vmatmul.mubr.bf16.gmra.mrb[4].mxu1 %v1104_v49  ;;  %v1117_v49 = vld [vmem:[%s1326_s0] sm:$0xff]  }
 0x124   :  { %1013 = vmatprep.mubr.bf16.mxu1 %v1105_v50 }
 0x12b   :  { %1014 = vmatmul.mubr.bf16.gmra.mrb[8].mxu1 %v1106_v51 }
 0x12c   :  { %1017 = vmatprep.mubr.bf16.mxu1 %v1107_v52 }
 0x133   :  { %1018 = vmatmul.mubr.bf16.gmra.mrb[12].mxu1 %v1108_v53 }
 0x134   :  { %1069 = vmatprep.mubr.bf16.mxu1 %v1117_v49 }
 0x1ee   :  { %v1007_v57 = vpop.f32.mrb[0].mxu1 }
 0x1ef   :  { %v365_v58 = vadd.f32 %v1007_v57, %v850_v56  ;;  %v356_v59 = vpop.f32.mrb[1].mxu1 }
 0x1f0   :  { %v357_v60 = vadd.f32 %v850_v56, %v356_v59  ;;  %v1008_v61 = vpop.f32.mrb[2].mxu1 }
 0x1f1   :  { %v368_v62 = vadd.f32 %v1008_v61, %v850_v56  ;;  %v359_v63 = vpop.f32.mrb[3].mxu1  ;;  %v421_v1 = vmax.f32 %v365_v58, 0.0 }
 0x1f2   :  { %v360_v0 = vadd.f32 %v850_v56, %v359_v63  ;;  %v419_v3 = vmax.f32 %v357_v60, 0.0 }
 0x1f3   :  { %v422_v2 = vmax.f32 %v368_v62, 0.0 }
 0x1f4   :  { %v420_v4 = vmax.f32 %v360_v0, 0.0 }
 0x1f5   :  { %v436_v5 = vpack.c.bf16 %v422_v2, %v421_v1 }
 0x1f6   :  { %v435_v6 = vpack.c.bf16 %v420_v4, %v419_v3  ;;  %v1011_v7 = vpop.f32.mrb[4].mxu1 }
 0x1f7   :  { %v381_v8 = vadd.f32 %v1011_v7, %v850_v56  ;;  %v372_v9 = vpop.f32.mrb[5].mxu1 }
 0x1f8   :  { %v373_v10 = vadd.f32 %v850_v56, %v372_v9  ;;  %v1012_v11 = vpop.f32.mrb[6].mxu1  ;;  %1037 = vmatprep.mubr.bf16.mxu0 %v435_v6 }
 0x1f9   :  { %v384_v12 = vadd.f32 %v1012_v11, %v850_v56  ;;  %v375_v13 = vpop.f32.mrb[7].mxu1  ;;  %1038 = vmatmul.mubr.bf16.vlgmr.msra.gmra.mrb[16].mxu0 %v436_v5  ;;  %v425_v15 = vmax.f32 %v381_v8, 0.0  ;;  %v1119_v11 = vld [vmem:[%s1326_s0 + $0x10] sm:$0xff]  }
 0x1fa   :  { %v376_v14 = vadd.f32 %v850_v56, %v375_v13  ;;  %v423_v17 = vmax.f32 %v373_v10, 0.0  ;;  %v1118_v10 = vld [vmem:[%s1326_s0 + $0x8] sm:$0xff]   ;;  %v1121_v13 = vld [vmem:[%s1326_s0 + $0x20] sm:$0xff]  }
 0x1fb   :  { %v426_v16 = vmax.f32 %v384_v12, 0.0  ;;  %v1120_v12 = vld [vmem:[%s1326_s0 + $0x18] sm:$0xff]  }
 0x1fc   :  { %v424_v18 = vmax.f32 %v376_v14, 0.0  ;;  %v1122_v14 = vld [vmem:[%s1326_s0 + $0x28] sm:$0xff]  }
 0x1fd   :  { %v438_v19 = vpack.c.bf16 %v426_v16, %v425_v15  ;;  %v1123_v15 = vld [vmem:[%s1326_s0 + $0x30] sm:$0xff]   ;;  %v1124_v16 = vld [vmem:[%s1326_s0 + $0x38] sm:$0xff]  }
 0x1fe   :  { %v437_v20 = vpack.c.bf16 %v424_v18, %v423_v17  ;;  %v1015_v21 = vpop.f32.mrb[8].mxu1  ;;  %v884_v17 = vld [vmem:[%s1327_s3 + $0x1] ss:$0 sm:$0xff] }
 0x1ff   :  { %v397_v22 = vadd.f32 %v1015_v21, %v850_v56  ;;  %v388_v23 = vpop.f32.mrb[9].mxu1 }
 0x200   :  { %v389_v24 = vadd.f32 %v850_v56, %v388_v23  ;;  %v1016_v25 = vpop.f32.mrb[10].mxu1  ;;  %1041 = vmatprep.mubr.bf16.mxu0 %v437_v20 }
 0x201   :  { %v400_v26 = vadd.f32 %v1016_v25, %v850_v56  ;;  %v391_v27 = vpop.f32.mrb[11].mxu1  ;;  %1042 = vmatmul.mubr.bf16.gmra.mrb[20].mxu0 %v438_v19  ;;  %v429_v29 = vmax.f32 %v397_v22, 0.0 }
 0x202   :  { %v392_v28 = vadd.f32 %v850_v56, %v391_v27  ;;  %v427_v31 = vmax.f32 %v389_v24, 0.0 }
 0x203   :  { %v430_v30 = vmax.f32 %v400_v26, 0.0 }
 0x204   :  { %v428_v32 = vmax.f32 %v392_v28, 0.0 }
 0x205   :  { %v440_v33 = vpack.c.bf16 %v430_v30, %v429_v29 }
 0x206   :  { %v439_v34 = vpack.c.bf16 %v428_v32, %v427_v31  ;;  %v1019_v35 = vpop.f32.mrb[12].mxu1 }
 0x207   :  { %v413_v36 = vadd.f32 %v1019_v35, %v850_v56  ;;  %v404_v37 = vpop.f32.mrb[13].mxu1 }
 0x208   :  { %v405_v38 = vadd.f32 %v850_v56, %v404_v37  ;;  %v1020_v39 = vpop.f32.mrb[14].mxu1  ;;  %1045 = vmatprep.mubr.bf16.mxu0 %v439_v34 }
 0x209   :  { %v416_v40 = vadd.f32 %v1020_v39, %v850_v56  ;;  %v407_v41 = vpop.f32.mrb[15].mxu1  ;;  %1046 = vmatmul.mubr.bf16.gmra.mrb[24].mxu0 %v440_v33  ;;  %v433_v43 = vmax.f32 %v413_v36, 0.0 }
 0x20a   :  { %v408_v42 = vadd.f32 %v850_v56, %v407_v41  ;;  %v431_v45 = vmax.f32 %v405_v38, 0.0 }
 0x20b   :  { %v434_v44 = vmax.f32 %v416_v40, 0.0 }
 0x20c   :  { %v432_v46 = vmax.f32 %v408_v42, 0.0 }
 0x20d   :  { %v442_v47 = vpack.c.bf16 %v434_v44, %v433_v43 }
 0x20e   :  { %v441_v48 = vpack.c.bf16 %v432_v46, %v431_v45 }
 0x210   :  { %1049 = vmatprep.mubr.bf16.mxu0 %v441_v48 }
 0x211   :  { %1050 = vmatmul.mubr.bf16.gmra.mrb[28].mxu0 %v442_v47 }
 0x2cc   :  { %v1039_v50 = vpop.f32.mrb[16].mxu0 }
 0x2cd   :  { %v558_v51 = vpop.f32.mrb[17].mxu0 }
 0x2ce   :  { %v1040_v52 = vpop.f32.mrb[18].mxu0 }
 0x2cf   :  { %v622_v53 = vpack.c.bf16 %v1040_v52, %v1039_v50  ;;  %v561_v54 = vpop.f32.mrb[19].mxu0 }
 0x2d0   :  { %v621_v55 = vpack.c.bf16 %v561_v54, %v558_v51 }
 0x2d2   :  { %1053 = vmatprep.subr.bf16.mxu1 %v621_v55 }
 0x2d3   :  { %1054 = vmatpush3.bf16.msra.mxu1 %v621_v55 }
 0x2d4   :  { %v1043_v56 = vpop.f32.mrb[20].mxu0  ;;  %1055 = vmatprep.subr.bf16.mxu1 %v622_v53 }
 0x2d5   :  { %v574_v57 = vpop.f32.mrb[21].mxu0 }
 0x2d6   :  { %v1044_v58 = vpop.f32.mrb[22].mxu0 }
 0x2d7   :  { %v624_v59 = vpack.c.bf16 %v1044_v58, %v1043_v56  ;;  %v577_v60 = vpop.f32.mrb[23].mxu0  ;;  %1056 = vmatpush3.bf16.msra.mxu1 %v622_v53 }
 0x2d8   :  { %v623_v61 = vpack.c.bf16 %v577_v60, %v574_v57 }
 0x2da   :  { %1057 = vmatprep.subr.bf16.mxu1 %v623_v61 }
 0x2db   :  { %1058 = vmatpush3.bf16.msra.mxu1 %v623_v61 }
 0x2dc   :  { %v1047_v62 = vpop.f32.mrb[24].mxu0  ;;  %1059 = vmatprep.subr.bf16.mxu1 %v624_v59 }
 0x2dd   :  { %v590_v63 = vpop.f32.mrb[25].mxu0 }
 0x2de   :  { %v1048_v0 = vpop.f32.mrb[26].mxu0 }
 0x2df   :  { %v626_v1 = vpack.c.bf16 %v1048_v0, %v1047_v62  ;;  %v593_v2 = vpop.f32.mrb[27].mxu0  ;;  %1060 = vmatpush3.bf16.msra.mxu1 %v624_v59 }
 0x2e0   :  { %v625_v3 = vpack.c.bf16 %v593_v2, %v590_v63 }
 0x2e2   :  { %1061 = vmatprep.subr.bf16.mxu1 %v625_v3 }
 0x2e3   :  { %1062 = vmatpush3.bf16.msra.mxu1 %v625_v3 }
 0x2e4   :  { %v1051_v4 = vpop.f32.mrb[28].mxu0  ;;  %1063 = vmatprep.subr.bf16.mxu1 %v626_v1 }
 0x2e5   :  { %v606_v5 = vpop.f32.mrb[29].mxu0 }
 0x2e6   :  { %v1052_v6 = vpop.f32.mrb[30].mxu0 }
 0x2e7   :  { %v628_v7 = vpack.c.bf16 %v1052_v6, %v1051_v4  ;;  %v609_v8 = vpop.f32.mrb[31].mxu0  ;;  %1064 = vmatpush3.bf16.msra.mxu1 %v626_v1 }
 0x2e8   :  { %v627_v9 = vpack.c.bf16 %v609_v8, %v606_v5 }
 0x2ea   :  { %1065 = vmatprep.subr.bf16.mxu1 %v627_v9 }
 0x2eb   :  { %1066 = vmatpush3.bf16.msra.mxu1 %v627_v9 }
 0x2ec   :  { %1067 = vmatprep.subr.bf16.mxu1 %v628_v7 }
 0x2ef   :  { %1068 = vmatpush3.bf16.msra.mxu1 %v628_v7 }
 0x2f2   :  { %1070 = vmatmul.mubr.bf16.vlgmr.msra.gmra.mrb[16].mxu1 %v1118_v10 }
 0x2f3   :  { %1073 = vmatprep.mubr.bf16.mxu1 %v1119_v11 }
 0x2fa   :  { %1074 = vmatmul.mubr.bf16.gmra.mrb[20].mxu1 %v1120_v12 }
 0x2fb   :  { %1077 = vmatprep.mubr.bf16.mxu1 %v1121_v13 }
 0x302   :  { %1078 = vmatmul.mubr.bf16.gmra.mrb[24].mxu1 %v1122_v14 }
 0x303   :  { %1081 = vmatprep.mubr.bf16.mxu1 %v1123_v15 }
 0x30a   :  { %1082 = vmatmul.mubr.bf16.gmra.mrb[28].mxu1 %v1124_v16 }
 0x3c5   :  { %v1071_v18 = vpop.f32.mrb[16].mxu1 }
 0x3c6   :  { %v744_v19 = vadd.f32 %v1071_v18, %v884_v17  ;;  %v735_v20 = vpop.f32.mrb[17].mxu1 }
 0x3c7   :  { %v736_v21 = vadd.f32 %v884_v17, %v735_v20  ;;  %v1072_v22 = vpop.f32.mrb[18].mxu1 }
 0x3c8   :  { %v800_v23 = vmax.f32 %v744_v19, 0.0  ;;  %v747_v24 = vadd.f32 %v1072_v22, %v884_v17  ;;  %v738_v25 = vpop.f32.mrb[19].mxu1 }
 0x3c9   :  { %v798_v26 = vmax.f32 %v736_v21, 0.0  ;;  %v739_v27 = vadd.f32 %v884_v17, %v738_v25 }
 0x3ca   :  { %816 = vst [vmem:[%s1328_s4 + $0x10] sm:$0xff] %v800_v23  ;;  %v801_v28 = vmax.f32 %v747_v24, 0.0 }
 0x3cb   :  { %814 = vst [vmem:[%s1328_s4] sm:$0xff] %v798_v26  ;;  %v799_v29 = vmax.f32 %v739_v27, 0.0 }
 0x3cc   :  { %817 = vst [vmem:[%s1328_s4 + $0x18] sm:$0xff] %v801_v28 }
 0x3cd   :  { %815 = vst [vmem:[%s1328_s4 + $0x8] sm:$0xff] %v799_v29  ;;  %v1075_v30 = vpop.f32.mrb[20].mxu1 }
 0x3ce   :  { %v760_v31 = vadd.f32 %v1075_v30, %v884_v17  ;;  %v751_v32 = vpop.f32.mrb[21].mxu1 }
 0x3cf   :  { %v752_v33 = vadd.f32 %v884_v17, %v751_v32  ;;  %v1076_v34 = vpop.f32.mrb[22].mxu1 }
 0x3d0   :  { %v804_v35 = vmax.f32 %v760_v31, 0.0  ;;  %v763_v36 = vadd.f32 %v1076_v34, %v884_v17  ;;  %v754_v37 = vpop.f32.mrb[23].mxu1 }
 0x3d1   :  { %v802_v38 = vmax.f32 %v752_v33, 0.0  ;;  %v755_v39 = vadd.f32 %v884_v17, %v754_v37 }
 0x3d2   :  { %820 = vst [vmem:[%s1328_s4 + $0x30] sm:$0xff] %v804_v35  ;;  %v805_v40 = vmax.f32 %v763_v36, 0.0 }
 0x3d3   :  { %818 = vst [vmem:[%s1328_s4 + $0x20] sm:$0xff] %v802_v38  ;;  %v803_v41 = vmax.f32 %v755_v39, 0.0 }
 0x3d4   :  { %821 = vst [vmem:[%s1328_s4 + $0x38] sm:$0xff] %v805_v40 }
 0x3d5   :  { %819 = vst [vmem:[%s1328_s4 + $0x28] sm:$0xff] %v803_v41  ;;  %v1079_v42 = vpop.f32.mrb[24].mxu1 }
 0x3d6   :  { %v776_v43 = vadd.f32 %v1079_v42, %v884_v17  ;;  %v767_v44 = vpop.f32.mrb[25].mxu1 }
 0x3d7   :  { %v768_v45 = vadd.f32 %v884_v17, %v767_v44  ;;  %v1080_v46 = vpop.f32.mrb[26].mxu1 }
 0x3d8   :  { %v808_v47 = vmax.f32 %v776_v43, 0.0  ;;  %v779_v48 = vadd.f32 %v1080_v46, %v884_v17  ;;  %v770_v49 = vpop.f32.mrb[27].mxu1 }
 0x3d9   :  { %v806_v50 = vmax.f32 %v768_v45, 0.0  ;;  %v771_v51 = vadd.f32 %v884_v17, %v770_v49 }
 0x3da   :  { %824 = vst [vmem:[%s1328_s4 + $0x50] sm:$0xff] %v808_v47  ;;  %v809_v52 = vmax.f32 %v779_v48, 0.0 }
 0x3db   :  { %822 = vst [vmem:[%s1328_s4 + $0x40] sm:$0xff] %v806_v50  ;;  %v807_v53 = vmax.f32 %v771_v51, 0.0 }
 0x3dc   :  { %825 = vst [vmem:[%s1328_s4 + $0x58] sm:$0xff] %v809_v52 }
 0x3dd   :  { %823 = vst [vmem:[%s1328_s4 + $0x48] sm:$0xff] %v807_v53  ;;  %v1083_v54 = vpop.f32.mrb[28].mxu1 }
 0x3de   :  { %v792_v55 = vadd.f32 %v1083_v54, %v884_v17  ;;  %v783_v56 = vpop.f32.mrb[29].mxu1 }
 0x3df   :  { %v784_v57 = vadd.f32 %v884_v17, %v783_v56  ;;  %v1084_v58 = vpop.f32.mrb[30].mxu1 }
 0x3e0   :  { %v812_v59 = vmax.f32 %v792_v55, 0.0  ;;  %v795_v60 = vadd.f32 %v1084_v58, %v884_v17  ;;  %v786_v61 = vpop.f32.mrb[31].mxu1 }
 0x3e1   :  { %v810_v62 = vmax.f32 %v784_v57, 0.0  ;;  %v787_v63 = vadd.f32 %v884_v17, %v786_v61 }
 0x3e2   :  { %828 = vst [vmem:[%s1328_s4 + $0x70] sm:$0xff] %v812_v59  ;;  %v813_v0 = vmax.f32 %v795_v60, 0.0 }
 0x3e3   :  { %826 = vst [vmem:[%s1328_s4 + $0x60] sm:$0xff] %v810_v62  ;;  %v811_v1 = vmax.f32 %v787_v63, 0.0 }
 0x3e4   :  { %829 = vst [vmem:[%s1328_s4 + $0x78] sm:$0xff] %v813_v0 }
 0x3e5   :  { %827 = vst [vmem:[%s1328_s4 + $0x68] sm:$0xff] %v811_v1 }

</bundles_post_ra>
